<compile_context>
chip_gen: v5e
topology: v5e:2x2
jax: 0.10.0
libtpu: 0.0.40
codegen_flags: <defaults>
</compile_context>

<pallas_src>
import math

import jax
import jax.numpy as jnp
from jax.experimental import pallas as pl
from jax.experimental.pallas import tpu as pltpu


# ---------------------------------------------------------------------------
# Kernel: one (D_in, block_m) feature-major slab of flattened rows per step.
#   x_ref  : (D_in, block_m)   rows on lanes (dense)
#   w1_ref : (H, D_in)         first Linear weight, torch [out, in] layout
#   w2_ref : (D_out, H)        second Linear weight, torch [out, in] layout
#   o_ref  : (D_out, block_m)  rows on lanes (dense, unmasked stores)
# ---------------------------------------------------------------------------
def mlp_kernel(x_ref, w1_ref, w2_ref, o_ref):
    # Linear(input_dim -> hidden_units, bias=False):  (H, D_in) @ (D_in, bm)
    h = jnp.dot(w1_ref[...], x_ref[...], preferred_element_type=jnp.float32)
    # Dropout(p) is identity in inference mode; then ReLU.
    h = jnp.maximum(h, 0.0)
    # Linear(hidden_units -> output_dim, bias=False):  (D_out, H) @ (H, bm)
    out = jnp.dot(w2_ref[...], h.astype(w2_ref.dtype),
                  preferred_element_type=jnp.float32)
    o_ref[...] = out.astype(o_ref.dtype)


def _round_up(x, m):
    return ((x + m - 1) // m) * m


def _vmem_capacity_bytes():
    try:
        return int(pltpu.get_tpu_info().vmem_capacity_bytes)
    except Exception:
        return 64 * 1024 * 1024  # conservative fallback (v7x per-TC VMEM)


# ---------------------------------------------------------------------------
# Block-size selection with (8,128)-padded VMEM footprints.
# ---------------------------------------------------------------------------
def _choose_block_m(M, d_in, h_dim, d_out, itemsize, budget_bytes):
    # Weights are resident with constant index_maps; Pallas still allocates two
    # pipeline buffers each, so count them twice (they are lane-padded too).
    w_bytes = 2 * itemsize * (
        _round_up(h_dim, 8) * _round_up(d_in, 128)
        + _round_up(d_out, 8) * _round_up(h_dim, 128))

    def fits(bm):
        bm_p = _round_up(bm, 128)                                   # lane axis
        x_bytes = 2 * _round_up(d_in, 8) * bm_p * itemsize          # 2x-buffered in
        o_bytes = 2 * _round_up(d_out, 8) * bm_p * itemsize         # 2x-buffered out
        f32_tmp = (_round_up(h_dim, 8) + _round_up(d_out, 8)) * bm_p * 4
        return x_bytes + o_bytes + w_bytes + f32_tmp <= budget_bytes

    # Small problems: a single full-width block (block dim == full array dim is
    # always legal); no artificial multi-step grid.
    if M <= 2048 and fits(M):
        return M
    for bm in (8192, 4096, 2048, 1024, 512, 256, 128):
        if bm <= _round_up(M, 128) and fits(bm):
            return bm
    return 128


# ---------------------------------------------------------------------------
# Wrapper (jitted): flattens leading dims into M, runs the kernel feature-major.
#   src : (..., input_dim)
#   w1  : (hidden_units, input_dim)   -- torch Linear weight layout [out, in]
#   w2  : (output_dim, hidden_units)
# returns (..., output_dim)
#
# Note: the single input/output transpose below exists only because this demo
# takes row-major (.., D_in) activations; a caller that keeps feature-major
# activations avoids it entirely.
# ---------------------------------------------------------------------------
@jax.jit
def mlp_forward(src, w1, w2):
    lead_shape = src.shape[:-1]
    d_in = src.shape[-1]
    h_dim = w1.shape[0]
    d_out = w2.shape[0]
    M = math.prod(lead_shape) if lead_shape else 1

    itemsize = jnp.dtype(src.dtype).itemsize
    cap = _vmem_capacity_bytes()
    # ~96 MiB on v5e/v6e (128 MiB physical), ~48 MiB on v7x (64 MiB physical).
    vmem_limit = min((cap * 3) // 4, 96 * 1024 * 1024)
    budget = vmem_limit - 4 * 1024 * 1024  # headroom for Mosaic internals

    block_m = _choose_block_m(M, d_in, h_dim, d_out, itemsize, budget)
    M_pad = _round_up(M, block_m)

    x_t = src.reshape(M, d_in).T                      # (D_in, M) feature-major
    if M_pad != M:
        x_t = jnp.pad(x_t, ((0, 0), (0, M_pad - M)))  # zero rows -> zero outputs

    flops = 2 * M_pad * (d_in * h_dim + h_dim * d_out)
    bytes_accessed = itemsize * (
        M_pad * d_in + d_in * h_dim + h_dim * d_out + M_pad * d_out)

    out_t = pl.pallas_call(
        mlp_kernel,
        out_shape=jax.ShapeDtypeStruct((d_out, M_pad), src.dtype),
        grid_spec=pltpu.PrefetchScalarGridSpec(
            num_scalar_prefetch=0,
            grid=(M_pad // block_m,),
            in_specs=[
                pl.BlockSpec((d_in, block_m), lambda i: (0, i)),
                pl.BlockSpec((h_dim, d_in), lambda i: (0, 0)),   # resident weight
                pl.BlockSpec((d_out, h_dim), lambda i: (0, 0)),  # resident weight
            ],
            out_specs=pl.BlockSpec((d_out, block_m), lambda i: (0, i)),
        ),
        compiler_params=pltpu.CompilerParams(
            dimension_semantics=("parallel",),
            vmem_limit_bytes=vmem_limit),
        cost_estimate=pl.CostEstimate(
            flops=flops, transcendentals=0, bytes_accessed=bytes_accessed),
    )(x_t, w1, w2)

    out = out_t[:, :M].T                              # (M, D_out)
    return out.reshape(*lead_shape, d_out)


# ---------------------------------------------------------------------------
# Pure-JAX reference (mirrors the torch module, eval mode) for a sanity check.
# ---------------------------------------------------------------------------
def mlp_reference(src, w1, w2):
    h = jnp.maximum(jnp.einsum("...d,hd->...h", src, w1,
                               precision=jax.lax.Precision.HIGHEST), 0.0)
    return jnp.einsum("...h,oh->...o", h, w2,
                      precision=jax.lax.Precision.HIGHEST)


# ---------------------------------------------------------------------------
if __name__ == "__main__":
    # batch=4, seq=16, input_dim(HID_DIM)=32, hidden(MLP_HIDDEN_UNITS)=64,
    # output_dim(DECODER_OUTPUT_LENGTH)=16
    B, S, D_IN, H, D_OUT = 4, 16, 32, 64, 16

    key = jax.random.PRNGKey(0)
    k_x, k_w1, k_w2 = jax.random.split(key, 3)

    src = jax.random.normal(k_x, (B, S, D_IN), dtype=jnp.float32)
    w1 = jax.random.normal(k_w1, (H, D_IN), dtype=jnp.float32) * 0.1
    w2 = jax.random.normal(k_w2, (D_OUT, H), dtype=jnp.float32) * 0.1

    out = jax.block_until_ready(mlp_forward(src, w1, w2))

    ref = mlp_reference(src, w1, w2)
    if out.shape != (B, S, D_OUT):
        raise AssertionError(f"unexpected output shape {out.shape}")
    if not jnp.allclose(out, ref, rtol=1e-3, atol=1e-3):
        raise AssertionError("Pallas kernel output does not match JAX reference")

    print("KERNEL_OK")
</pallas_src>

<mosaic_0001>
module attributes {stable_mosaic.version = 11 : i64} {
  func.func @mlp_kernel(%arg0: i32, %arg1: memref<32x64xf32, #tpu.memory_space<vmem>>, %arg2: memref<64x32xf32, #tpu.memory_space<vmem>>, %arg3: memref<16x64xf32, #tpu.memory_space<vmem>>, %arg4: memref<16x64xf32, #tpu.memory_space<vmem>>) attributes {dimension_semantics = [#tpu.dimension_semantics<parallel>], iteration_bounds = array<i64: 1>, scalar_prefetch = 0 : i64, scratch_operands = 0 : i64, tpu.core_type = #tpu.core_type<tc>, window_params = [{transform_indices = @transform_0, window_bounds = array<i64: 32, 64>}, {pipeline_mode = #tpu.pipeline_mode<synchronous>, transform_indices = @transform_1, window_bounds = array<i64: 64, 32>}, {pipeline_mode = #tpu.pipeline_mode<synchronous>, transform_indices = @transform_2, window_bounds = array<i64: 16, 64>}, {transform_indices = @transform_3, window_bounds = array<i64: 16, 64>}]} {
    %c0 = arith.constant 0 : index
    %c0_0 = arith.constant 0 : index
    %0 = vector.load %arg2[%c0, %c0_0] : memref<64x32xf32, #tpu.memory_space<vmem>>, vector<64x32xf32>
    %c0_1 = arith.constant 0 : index
    %c0_2 = arith.constant 0 : index
    %1 = vector.load %arg1[%c0_1, %c0_2] : memref<32x64xf32, #tpu.memory_space<vmem>>, vector<32x64xf32>
    %cst = arith.constant dense<0.000000e+00> : vector<64x64xf32>
    %2 = tpu.matmul %0, %1, %cst {dimension_numbers = #tpu.dot_dimension_numbers<[1], [0], [0], [1], [0, 0, 1, 1], [], []>} : vector<64x32xf32>, vector<32x64xf32>, vector<64x64xf32> -> vector<64x64xf32>
    %cst_3 = arith.constant 0.000000e+00 : f32
    %3 = vector.broadcast %cst_3 : f32 to vector<64x64xf32>
    %4 = arith.maximumf %2, %3 : vector<64x64xf32>
    %c0_4 = arith.constant 0 : index
    %c0_5 = arith.constant 0 : index
    %5 = vector.load %arg3[%c0_4, %c0_5] : memref<16x64xf32, #tpu.memory_space<vmem>>, vector<16x64xf32>
    %cst_6 = arith.constant dense<0.000000e+00> : vector<16x64xf32>
    %6 = tpu.matmul %5, %4, %cst_6 {dimension_numbers = #tpu.dot_dimension_numbers<[1], [0], [0], [1], [0, 0, 1, 1], [], []>} : vector<16x64xf32>, vector<64x64xf32>, vector<16x64xf32> -> vector<16x64xf32>
    %c0_7 = arith.constant 0 : index
    %c0_8 = arith.constant 0 : index
    %7 = vector.load %arg4[%c0_7, %c0_8] : memref<16x64xf32, #tpu.memory_space<vmem>>, vector<16x64xf32>
    tpu.vector_store %arg4[%c0_7, %c0_8], %6 {strides = array<i32>} : memref<16x64xf32, #tpu.memory_space<vmem>>, vector<16x64xf32>,
    return
  }
  func.func @transform_0(%arg0: i32) -> (i32, i32) {
    %c0_i32 = arith.constant 0 : i32
    %c0_i32_0 = arith.constant 0 : i32
    return %c0_i32, %arg0 : i32, i32
  }
  func.func @transform_1(%arg0: i32) -> (i32, i32) {
    %c0_i32 = arith.constant 0 : i32
    %c0_i32_0 = arith.constant 0 : i32
    %c0_i32_1 = arith.constant 0 : i32
    return %c0_i32, %c0_i32_0 : i32, i32
  }
  func.func @transform_2(%arg0: i32) -> (i32, i32) {
    %c0_i32 = arith.constant 0 : i32
    %c0_i32_0 = arith.constant 0 : i32
    %c0_i32_1 = arith.constant 0 : i32
    return %c0_i32, %c0_i32_0 : i32, i32
  }
  func.func @transform_3(%arg0: i32) -> (i32, i32) {
    %c0_i32 = arith.constant 0 : i32
    %c0_i32_0 = arith.constant 0 : i32
    return %c0_i32, %arg0 : i32, i32
  }
}

</mosaic_0001>

<bundles_post_ra>
// kernel: mlp_forward.1
= control target key start
LH: loop header
LB: loop body
LE: loop exit
PB: predicated region body
PF: predicated region fallthrough
CT: control target
= control target key end

     0   :  { %vm26_vm0 = vcmask 261120   ;;  %vm102_vm1 = vcmask 523264   ;;  %s232_s0 = inlined_call_operand.vmem [shape: f32[32,64], index: 0, kind: input, shape index: {}]   ;;  %s233_s1 = inlined_call_operand.vmem [shape: f32[64,32], index: 1, kind: input, shape index: {}]   ;;  %s234_s2 = inlined_call_operand.vmem [shape: f32[16,64], index: 2, kind: input, shape index: {}]   ;;  %s235_s3 = inlined_call_operand.vmem [shape: f32[16,64], index: 3, kind: output, shape index: {}]  }
   0x1   :  { %v25_v0 = vld [vmem:[%s232_s0 + $0x18] sm:$0xff]  ;;  %v24_v1 = vld [vmem:[%s232_s0 + $0x10] sm:$0xff]  ;;  %v23_v2 = vld [vmem:[%s232_s0 + $0x8] sm:$0xff] }
   0x2   :  { %148 = vmatpush.msra.mxu2 %v25_v0  ;;  %149 = vmatpush.msra.mxu3 %v25_v0  ;;  %v22_v3 = vld [vmem:[%s232_s0] sm:$0xff]  ;;  %v17_v4 = vld [vmem:[%s233_s1 + $0x18] sm:$0xff]  ;;  %v20_v5 = vld [vmem:[%s233_s1 + $0x30] sm:$0xff] }
   0x3   :  { %63 = vmatpush.msra.mxu0 %v25_v0  ;;  %v14_v6 = vld [vmem:[%s233_s1] sm:$0xff]  ;;  %v21_v8 = vld [vmem:[%s233_s1 + $0x38] sm:$0xff]  ;;  %v15_v9 = vld [vmem:[%s233_s1 + $0x8] sm:$0xff] }
   0x4   :  { %150 = vmatpush.msra.mxu2 %v24_v1  ;;  %151 = vmatpush.msra.mxu3 %v24_v1  ;;  %v18_v7 = vld [vmem:[%s233_s1 + $0x20] sm:$0xff]  ;;  %v19_v10 = vld [vmem:[%s233_s1 + $0x28] sm:$0xff]  ;;  %v16_v11 = vld [vmem:[%s233_s1 + $0x10] sm:$0xff] }
   0x5   :  { %64 = vmatpush.msra.mxu0 %v24_v1  ;;  %v100_v28 = vld [vmem:[%s234_s2] sm:$0xff]  ;;  %v101_v29 = vld [vmem:[%s234_s2 + $0x8] sm:$0xff] }
   0x6   :  { %152 = vmatpush.msra.mxu2 %v23_v2  ;;  %153 = vmatpush.msra.mxu3 %v23_v2 }
   0x7   :  { %65 = vmatpush.msra.mxu0 %v23_v2 }
   0x8   :  { %154 = vmatpush.msra.mxu2 %v22_v3  ;;  %155 = vmatpush.msra.mxu3 %v22_v3 }
   0x9   :  { %141 = vmatmul.msk.f32.vlgmr.msra.gmra.mxu2 %vm26_vm0, %v17_v4  ;;  %144 = vmatmul.msk.f32.vlgmr.msra.gmra.mxu3 %vm26_vm0, %v20_v5 }
   0xa   :  { %66 = vmatpush.msra.mxu0 %v22_v3 }
   0xb   :  { %138 = vmatmul.msk.f32.vlgmr.msra.gmra.mxu0 %vm26_vm0, %v14_v6 }
  0x11   :  { %142 = vmatmul.msk.f32.gmra.mxu2 %vm26_vm0, %v18_v7  ;;  %145 = vmatmul.msk.f32.gmra.mxu3 %vm26_vm0, %v21_v8 }
  0x13   :  { %139 = vmatmul.msk.f32.gmra.mxu0 %vm26_vm0, %v15_v9 }
  0x19   :  { %143 = vmatmul.msk.f32.gmra.mxu2 %vm26_vm0, %v19_v10 }
  0x1b   :  { %140 = vmatmul.msk.f32.gmra.mxu0 %vm26_vm0, %v16_v11 }
  0x88   :  { %v68_v12 = vpop.f32.mrf.mxu0 }
  0x89   :  { %v92_v27 = vmax.f32 %v68_v12, 0.0 }
  0x8c   :  { %v77_v13 = vpop.f32.mrf.mxu2  ;;  %v86_v14 = vpop.f32.mrf.mxu3 }
  0x8d   :  { %v98_v19 = vmax.f32 %v86_v14, 0.0  ;;  %v95_v24 = vmax.f32 %v77_v13, 0.0 }
  0x90   :  { %v71_v15 = vpop.f32.mrf.mxu0 }
  0x91   :  { %v93_v26 = vmax.f32 %v71_v15, 0.0 }
  0x94   :  { %v80_v16 = vpop.f32.mrf.mxu2  ;;  %v89_v17 = vpop.f32.mrf.mxu3 }
  0x95   :  { %v99_v18 = vmax.f32 %v89_v17, 0.0  ;;  %v96_v23 = vmax.f32 %v80_v16, 0.0 }
  0x97   :  { %117 = vmatpush.msra.mxu1 %v99_v18 }
  0x98   :  { %v74_v22 = vpop.f32.mrf.mxu0 }
  0x99   :  { %118 = vmatpush.msra.mxu1 %v98_v19  ;;  %v94_v25 = vmax.f32 %v74_v22, 0.0 }
  0x9c   :  { %v83_v20 = vpop.f32.mrf.mxu2 }
  0x9d   :  { %v97_v21 = vmax.f32 %v83_v20, 0.0 }
  0x9f   :  { %119 = vmatpush.msra.mxu1 %v97_v21 }
  0xa1   :  { %120 = vmatpush.msra.mxu1 %v96_v23 }
  0xa3   :  { %121 = vmatpush.msra.mxu1 %v95_v24 }
  0xa5   :  { %122 = vmatpush.msra.mxu1 %v94_v25 }
  0xa7   :  { %123 = vmatpush.msra.mxu1 %v93_v26 }
  0xa9   :  { %124 = vmatpush.msra.mxu1 %v92_v27 }
  0xaa   :  { %146 = vmatmul.msk.f32.vlgmr.msra.gmra.mxu1 %vm102_vm1, %v100_v28 }
  0xb2   :  { %147 = vmatmul.msk.f32.gmra.mxu1 %vm102_vm1, %v101_v29 }
 0x127   :  { %v126_v30 = vpop.f32.mrf.mxu1 }
 0x128   :  { %132 = vst.msk [vmem:[%s235_s3] sm:$0xff] %vm102_vm1, %v126_v30 }
 0x12f   :  { %v129_v31 = vpop.f32.mrf.mxu1 }
 0x130   :  { %133 = vst.msk [vmem:[%s235_s3 + $0x8] sm:$0xff] %vm102_vm1, %v129_v31 }

</bundles_post_ra>
